<compile_context>
chip_gen: v6e
topology: v6e:2x2x1
jax: 0.10.0
libtpu: 0.0.40
codegen_flags: <defaults>
</compile_context>

<pallas_src>
import math
from functools import partial

import jax
import jax.numpy as jnp
from jax.experimental import pallas as pl
from jax.experimental.pallas import tpu as pltpu


def _round_up(x, m):
    return (x + m - 1) // m * m


def _decoder_kernel(x_ref, w1_ref, b1_ref, w2_ref, b2_ref, o_ref):
    # Layer 1: (TB,24)@(24,32) + b1 -> ReLU.  Tiny; recomputed per N-tile.
    h = jnp.dot(x_ref[...], w1_ref[...], preferred_element_type=jnp.float32)
    h = jnp.maximum(h + b1_ref[...], 0.0)
    # Layer 2: (TB,32)@(32,TN) + b2 -> ReLU, lane-dense store.
    y = jnp.dot(h, w2_ref[...], preferred_element_type=jnp.float32)
    o_ref[...] = jnp.maximum(y + b2_ref[...], 0.0)


def ae_decoder_forward(x, params, *, in_features, channels=1, input_img=True):
    """x: (B, 24) float32.  Returns (B, C, s, s) if input_img else (B, F*C)."""
    w1, b1, w2, b2 = params
    B = x.shape[0]
    out_dim = in_features * channels

    # ---- batch tiling (grid axis 0) -----------------------------------------
    B8 = _round_up(max(B, 1), 8)          # f32 sublane granule
    TB = min(512, B8)                     # 256-512 rows -> good DMA overlap
    B_pad = _round_up(B8, TB)
    if B_pad != B:
        x = jnp.pad(x, ((0, B_pad - B), (0, 0)))

    # ---- output / N tiling (grid axis 1) ------------------------------------
    if out_dim % 128 == 0:
        TN = next(t for t in (1024, 512, 256, 128) if out_dim % t == 0)
    else:
        # Lane-sparse fallback: block == full out_dim (correct; masked stores).
        TN = out_dim
    grid = (B_pad // TB, out_dim // TN)

    cost = pl.CostEstimate(
        flops=2 * B_pad * (24 * 32 + 32 * out_dim),
        transcendentals=0,
        bytes_accessed=4 * (B_pad * 24 + 24 * 32 + 32
                            + 32 * out_dim + out_dim + B_pad * out_dim),
    )

    out2d = pl.pallas_call(
        _decoder_kernel,
        out_shape=jax.ShapeDtypeStruct((B_pad, out_dim), jnp.float32),
        grid_spec=pl.GridSpec(
            grid=grid,
            in_specs=[
                pl.BlockSpec((TB, 24), lambda i, j: (i, 0)),   # x tile
                pl.BlockSpec((24, 32), lambda i, j: (0, 0)),   # w1 (resident)
                pl.BlockSpec((1, 32),  lambda i, j: (0, 0)),   # b1 (resident)
                pl.BlockSpec((32, TN), lambda i, j: (0, j)),   # w2 N-slice
                pl.BlockSpec((1, TN),  lambda i, j: (0, j)),   # b2 N-slice
            ],
            out_specs=pl.BlockSpec((TB, TN), lambda i, j: (i, j)),
        ),
        compiler_params=pltpu.CompilerParams(
            dimension_semantics=("parallel", "parallel")),
        cost_estimate=cost,
    )(x, w1, b1, w2, b2)

    if B_pad != B:
        out2d = out2d[:B]

    if input_img:
        s = int(math.isqrt(in_features))
        assert s * s == in_features, "in_features must be a perfect square"
        return out2d.reshape(B, channels, s, s)
    return out2d


def init_params(key, *, in_features, channels=1):
    """Deterministic PyTorch-Linear-style (uniform) init."""
    out_dim = in_features * channels
    k1, k2, k3, k4 = jax.random.split(key, 4)
    bound1 = 1.0 / math.sqrt(24)
    bound2 = 1.0 / math.sqrt(32)
    w1 = jax.random.uniform(k1, (24, 32), jnp.float32, -bound1, bound1)
    b1 = jax.random.uniform(k2, (1, 32), jnp.float32, -bound1, bound1)
    w2 = jax.random.uniform(k3, (32, out_dim), jnp.float32, -bound2, bound2)
    b2 = jax.random.uniform(k4, (1, out_dim), jnp.float32, -bound2, bound2)
    return (w1, b1, w2, b2)


def _reference(x, params, *, in_features, channels, input_img):
    w1, b1, w2, b2 = params
    h = jnp.maximum(x @ w1 + b1, 0.0)
    y = jnp.maximum(h @ w2 + b2, 0.0)
    if input_img:
        s = int(math.isqrt(in_features))
        y = y.reshape(x.shape[0], channels, s, s)
    return y


if __name__ == "__main__":
    # Small but lane-dense example: 16x16 image, 4 channels -> out_dim = 1024.
    in_features = 256   # sqrt = 16
    channels = 4
    B = 2

    key = jax.random.PRNGKey(0)
    kx, kp = jax.random.split(key)
    x = jax.random.normal(kx, (B, 24), jnp.float32)
    params = init_params(kp, in_features=in_features, channels=channels)

    fwd = jax.jit(partial(ae_decoder_forward, in_features=in_features,
                          channels=channels, input_img=True))
    out = fwd(x, params)
    jax.block_until_ready(out)

    ref = _reference(x, params, in_features=in_features,
                     channels=channels, input_img=True)
    assert out.shape == (B, channels, 16, 16), out.shape
    assert jnp.allclose(out, ref, atol=1e-5, rtol=1e-5)

    print("KERNEL_OK")
</pallas_src>

<mosaic_0001>
module attributes {stable_mosaic.version = 11 : i64} {
  func.func @_decoder_kernel(%arg0: i32, %arg1: i32, %arg2: memref<8x24xf32, #tpu.memory_space<vmem>>, %arg3: memref<24x32xf32, #tpu.memory_space<vmem>>, %arg4: memref<1x32xf32, #tpu.memory_space<vmem>>, %arg5: memref<32x1024xf32, #tpu.memory_space<vmem>>, %arg6: memref<1x1024xf32, #tpu.memory_space<vmem>>, %arg7: memref<8x1024xf32, #tpu.memory_space<vmem>>) attributes {dimension_semantics = [#tpu.dimension_semantics<parallel>, #tpu.dimension_semantics<parallel>], iteration_bounds = array<i64: 1, 1>, scalar_prefetch = 0 : i64, scratch_operands = 0 : i64, tpu.core_type = #tpu.core_type<tc>, window_params = [{transform_indices = @transform_0, window_bounds = array<i64: 8, 24>}, {pipeline_mode = #tpu.pipeline_mode<synchronous>, transform_indices = @transform_1, window_bounds = array<i64: 24, 32>}, {pipeline_mode = #tpu.pipeline_mode<synchronous>, transform_indices = @transform_2, window_bounds = array<i64: 1, 32>}, {transform_indices = @transform_3, window_bounds = array<i64: 32, 1024>}, {transform_indices = @transform_4, window_bounds = array<i64: 1, 1024>}, {transform_indices = @transform_5, window_bounds = array<i64: 8, 1024>}]} {
    %c0 = arith.constant 0 : index
    %c0_0 = arith.constant 0 : index
    %0 = vector.load %arg2[%c0, %c0_0] : memref<8x24xf32, #tpu.memory_space<vmem>>, vector<8x24xf32>
    %c0_1 = arith.constant 0 : index
    %c0_2 = arith.constant 0 : index
    %1 = vector.load %arg3[%c0_1, %c0_2] : memref<24x32xf32, #tpu.memory_space<vmem>>, vector<24x32xf32>
    %cst = arith.constant dense<0.000000e+00> : vector<8x32xf32>
    %2 = tpu.matmul %0, %1, %cst {dimension_numbers = #tpu.dot_dimension_numbers<[1], [0], [0], [1], [0, 0, 1, 1], [], []>} : vector<8x24xf32>, vector<24x32xf32>, vector<8x32xf32> -> vector<8x32xf32>
    %c0_3 = arith.constant 0 : index
    %c0_4 = arith.constant 0 : index
    %3 = vector.load %arg4[%c0_3, %c0_4] : memref<1x32xf32, #tpu.memory_space<vmem>>, vector<1x32xf32>
    %4 = vector.broadcast %3 : vector<1x32xf32> to vector<8x32xf32>
    %5 = arith.addf %2, %4 : vector<8x32xf32>
    %cst_5 = arith.constant 0.000000e+00 : f32
    %6 = vector.broadcast %cst_5 : f32 to vector<8x32xf32>
    %7 = arith.maximumf %5, %6 : vector<8x32xf32>
    %c0_6 = arith.constant 0 : index
    %c0_7 = arith.constant 0 : index
    %8 = vector.load %arg5[%c0_6, %c0_7] : memref<32x1024xf32, #tpu.memory_space<vmem>>, vector<32x1024xf32>
    %cst_8 = arith.constant dense<0.000000e+00> : vector<8x1024xf32>
    %9 = tpu.matmul %7, %8, %cst_8 {dimension_numbers = #tpu.dot_dimension_numbers<[1], [0], [0], [1], [0, 0, 1, 1], [], []>} : vector<8x32xf32>, vector<32x1024xf32>, vector<8x1024xf32> -> vector<8x1024xf32>
    %c0_9 = arith.constant 0 : index
    %c0_10 = arith.constant 0 : index
    %10 = vector.load %arg6[%c0_9, %c0_10] : memref<1x1024xf32, #tpu.memory_space<vmem>>, vector<1x1024xf32>
    %11 = vector.broadcast %10 : vector<1x1024xf32> to vector<8x1024xf32>
    %12 = arith.addf %9, %11 : vector<8x1024xf32>
    %cst_11 = arith.constant 0.000000e+00 : f32
    %13 = vector.broadcast %cst_11 : f32 to vector<8x1024xf32>
    %14 = arith.maximumf %12, %13 : vector<8x1024xf32>
    %c0_12 = arith.constant 0 : index
    %c0_13 = arith.constant 0 : index
    %15 = vector.load %arg7[%c0_12, %c0_13] : memref<8x1024xf32, #tpu.memory_space<vmem>>, vector<8x1024xf32>
    tpu.vector_store %arg7[%c0_12, %c0_13], %14 {strides = array<i32>} : memref<8x1024xf32, #tpu.memory_space<vmem>>, vector<8x1024xf32>,
    return
  }
  func.func @transform_0(%arg0: i32, %arg1: i32) -> (i32, i32) {
    %c0_i32 = arith.constant 0 : i32
    %c0_i32_0 = arith.constant 0 : i32
    return %arg0, %c0_i32 : i32, i32
  }
  func.func @transform_1(%arg0: i32, %arg1: i32) -> (i32, i32) {
    %c0_i32 = arith.constant 0 : i32
    %c0_i32_0 = arith.constant 0 : i32
    %c0_i32_1 = arith.constant 0 : i32
    return %c0_i32, %c0_i32_0 : i32, i32
  }
  func.func @transform_2(%arg0: i32, %arg1: i32) -> (i32, i32) {
    %c0_i32 = arith.constant 0 : i32
    %c0_i32_0 = arith.constant 0 : i32
    %c0_i32_1 = arith.constant 0 : i32
    return %c0_i32, %c0_i32_0 : i32, i32
  }
  func.func @transform_3(%arg0: i32, %arg1: i32) -> (i32, i32) {
    %c0_i32 = arith.constant 0 : i32
    %c0_i32_0 = arith.constant 0 : i32
    return %c0_i32, %arg1 : i32, i32
  }
  func.func @transform_4(%arg0: i32, %arg1: i32) -> (i32, i32) {
    %c0_i32 = arith.constant 0 : i32
    %c0_i32_0 = arith.constant 0 : i32
    return %c0_i32, %arg1 : i32, i32
  }
  func.func @transform_5(%arg0: i32, %arg1: i32) -> (i32, i32) {
    %c0_i32 = arith.constant 0 : i32
    return %arg0, %arg1 : i32, i32
  }
}

</mosaic_0001>

<bundles_post_ra>
// kernel: ae_decoder_forward.1
= control target key start
LH: loop header
LB: loop body
LE: loop exit
PB: predicated region body
PF: predicated region fallthrough
CT: control target
= control target key end

     0   :  { %10 = vsyncpa [#allocation3], 0  ;;  %s678_s0 = inlined_call_operand.vmem [shape: f32[8,24], index: 0, kind: input, shape index: {}]   ;;  %s679_s1 = inlined_call_operand.hbm [shape: f32[24,32], index: 1, kind: input, shape index: {}]   ;;  %s680_s2 = inlined_call_operand.vmem [shape: f32[1,32], index: 2, kind: input, shape index: {}]   ;;  %s681_s3 = inlined_call_operand.hbm [shape: f32[32,1024], index: 3, kind: input, shape index: {}]   ;;  %s682_s4 = inlined_call_operand.vmem [shape: f32[1,1024], index: 4, kind: input, shape index: {}]   ;;  %s683_s5 = inlined_call_operand.vmem [shape: f32[8,1024], index: 5, kind: output, shape index: {}]  }
   0x1   :  { %11 = vsyncpa [#allocation5], 0  ;;  %s589_s18 = smov [#allocation2]  }
   0x2   :  { %s19_s19 = sshll.u32 %s589_s18, 4  ;;  %s20_s19 = int_to_ptr.vmem [resolvable:$true] %s19_s19 }
   0x3   :  { %s553_s20 = scalar_lea.vmem %s20_s19, 384  ;;  %p558_p1 = scmp.lt.s32.totalorder %s20_s19, %s20_s19 }
   0x4   :  { %p554_p0 = scmp.ne.s32.totalorder %s20_s19, %s553_s20  ;;  %p559_p2 = scmp.lt.s32.totalorder %s553_s20, %s553_s20 }
   0x6   :  { %p560_p3 = por %p559_p2, %p558_p1 }
   0x8   :  { %p561_p4 = pnand %p560_p3, %p554_p0 }
   0xa   :  { %564 = shalt.err (!%p561_p4)
}
   0xb   :  { %s590_s21 = smov 128   ;;  %s591_s22 = smov 8  }
   0xc   :  { %25 = dma.hbm_to_vmem [thread:$0]  %s679_s1, 384, %s20_s19, [#allocation3], %s590_s21, %s590_s21, %s591_s22  }
   0xd   :  { %s592_s25 = smov [#allocation4]  }
   0xe   :  { %s33_s26 = sshll.u32 %s592_s25, 4  ;;  %s34_s26 = int_to_ptr.vmem [resolvable:$true] %s33_s26 }
   0xf   :  { %s573_s27 = scalar_lea.vmem %s34_s26, 4096  ;;  %p578_p6 = scmp.lt.s32.totalorder %s34_s26, %s34_s26 }
  0x10   :  { %p574_p5 = scmp.ne.s32.totalorder %s34_s26, %s573_s27  ;;  %p579_p7 = scmp.lt.s32.totalorder %s573_s27, %s573_s27 }
  0x12   :  { %p580_p8 = por %p579_p7, %p578_p6 }
  0x14   :  { %p581_p9 = pnand %p580_p8, %p574_p5 }
  0x16   :  { %584 = shalt.err (!%p581_p9)
}
  0x17   :  { %s593_s28 = smov 1024   ;;  %s594_s29 = smov 64  }
  0x18   :  { %39 = dma.hbm_to_vmem [thread:$0]  %s681_s3, 4096, %s34_s26, [#allocation5], %s593_s28, %s593_s28, %s594_s29  }
  0x19   :  { %585 = dma.done.wait [#allocation3], 384  }
  0x1a   :  { %586 = vsyncadd [#allocation3], 4294966912 }
  0x1b   :  { %587 = dma.done.wait [#allocation5], 4096  }
  0x1c   :  { %588 = vsyncadd [#allocation5], 4294963200  ;;  %v595_v0 = vmov 0.0   ;;  %vm596_vm0 = vmmov 0   ;;  %v51_v1 = vld [vmem:[#allocation2 + $0x10] sm:$0xff]  ;;  %v50_v2 = vld [vmem:[#allocation2 + $0x8] sm:$0xff]  ;;  %v168_v42 = vlaneseq }
  0x1d   :  { %528 = vmatprep.subr.mxu0 %v595_v0  ;;  %534 = vmatprep.mubr.msk.f32.mxu0 %vm596_vm0, %v595_v0  ;;  %v159_v3 = vld [vmem:[#allocation4 + $0xc8] sm:$0xff]  ;;  %v158_v5 = vld [vmem:[#allocation4 + $0xc0] sm:$0xff]  ;;  %vm59_vm1 = vcmask 195584   ;;  %v161_v8 = vld [vmem:[#allocation4 + $0xd8] sm:$0xff]  ;;  %vm208_vm2 = vcmask 261120  }
  0x1e   :  { %276 = vmatprep.mubr.f32.mxu1 %v595_v0  ;;  %529 = vmatpush3.msra.mxu0 %v51_v1  ;;  %v49_v4 = vld [vmem:[#allocation2] sm:$0xff]  ;;  %v150_v9 = vld [vmem:[#allocation4 + $0x80] sm:$0xff]  ;;  %v160_v10 = vld [vmem:[#allocation4 + $0xd0] sm:$0xff]  ;;  %v169_v43 = vshrl.u32 %v168_v42, 7 }
  0x1f   :  { %530 = vmatprep.subr.mxu0 %v595_v0  ;;  %236 = vmatprep.subr.mxu1 %v159_v3  ;;  %v151_v6 = vld [vmem:[#allocation4 + $0x88] sm:$0xff]  ;;  %v153_v11 = vld [vmem:[#allocation4 + $0x98] sm:$0xff]  ;;  %v152_v12 = vld [vmem:[#allocation4 + $0x90] sm:$0xff] }
  0x20   :  { %531 = vmatpush3.msra.mxu0 %v50_v2  ;;  %v48_v7 = vld [vmem:[%s678_s0] sm:$0xff]  ;;  %237 = vmatpush1.msra.mxu1 %v158_v5  ;;  %v145_v14 = vld [vmem:[#allocation4 + $0x58] sm:$0xff]  ;;  %v142_v15 = vld [vmem:[#allocation4 + $0x40] sm:$0xff]  ;;  %v170_v44 = vsub.s32 0, %v169_v43  ;;  %v178_v45 = vsub.s32 2, %v169_v43  ;;  %v174_v47 = vsub.s32 1, %v169_v43 }
  0x21   :  { %532 = vmatprep.subr.mxu0 %v595_v0  ;;  %238 = vmatprep.subr.mxu1 %v151_v6  ;;  %v143_v13 = vld [vmem:[#allocation4 + $0x48] sm:$0xff]  ;;  %v144_v16 = vld [vmem:[#allocation4 + $0x50] sm:$0xff]  ;;  %v137_v18 = vld [vmem:[#allocation4 + $0x18] sm:$0xff]  ;;  %v182_v48 = vsub.s32 3, %v169_v43  ;;  %v186_v59 = vsub.s32 4, %v169_v43  ;;  %v194_v60 = vsub.s32 6, %v169_v43 }
  0x22   :  { %533 = vmatpush3.msra.mxu0 %v49_v4  ;;  %239 = vmatpush1.msra.mxu1 %v150_v9  ;;  %v135_v17 = vld [vmem:[#allocation4 + $0x8] sm:$0xff]  ;;  %v134_v19 = vld [vmem:[#allocation4] sm:$0xff]  ;;  %v136_v20 = vld [vmem:[#allocation4 + $0x10] sm:$0xff]  ;;  %v190_v1 = vsub.s32 5, %v169_v43  ;;  %v198_v2 = vsub.s32 7, %v169_v43 }
  0x23   :  { %535 = vmatmul.mubr.msk.f32.vlgmr.msra.gmra.mxu0 %vm59_vm1, %v48_v7  ;;  %307 = vmatprep.subr.mxu0 %v161_v8  ;;  %v163_v21 = vld [vmem:[#allocation4 + $0xe8] sm:$0xff]  ;;  %v165_v22 = vld [vmem:[#allocation4 + $0xf8] sm:$0xff]  ;;  %v162_v28 = vld [vmem:[#allocation4 + $0xe0] sm:$0xff] }
  0x24   :  { %308 = vmatpush1.msra.mxu0 %v160_v10  ;;  %347 = vmatprep.mubr.f32.mxu0 %v595_v0  ;;  %v518_v23 = vld [vmem:[%s680_s2] ss:$0 sm:$0xff]  ;;  %v164_v29 = vld [vmem:[#allocation4 + $0xf0] sm:$0xff]  ;;  %v157_v31 = vld [vmem:[#allocation4 + $0xb8] sm:$0xff] }
  0x25   :  { %309 = vmatprep.subr.mxu0 %v153_v11  ;;  %240 = vmatprep.subr.mxu1 %v143_v13  ;;  %v155_v30 = vld [vmem:[#allocation4 + $0xa8] sm:$0xff]  ;;  %v154_v32 = vld [vmem:[#allocation4 + $0xa0] sm:$0xff]  ;;  %v156_v33 = vld [vmem:[#allocation4 + $0xb0] sm:$0xff] }
  0x26   :  { %310 = vmatpush1.msra.mxu0 %v152_v12  ;;  %241 = vmatpush1.msra.mxu1 %v142_v15  ;;  %v147_v34 = vld [vmem:[#allocation4 + $0x68] sm:$0xff]  ;;  %v149_v35 = vld [vmem:[#allocation4 + $0x78] sm:$0xff]  ;;  %v146_v36 = vld [vmem:[#allocation4 + $0x60] sm:$0xff] }
  0x27   :  { %311 = vmatprep.subr.mxu0 %v145_v14  ;;  %242 = vmatprep.subr.mxu1 %v135_v17  ;;  %v148_v37 = vld [vmem:[#allocation4 + $0x70] sm:$0xff]  ;;  %v139_v38 = vld [vmem:[#allocation4 + $0x28] sm:$0xff]  ;;  %v141_v39 = vld [vmem:[#allocation4 + $0x38] sm:$0xff] }
  0x28   :  { %312 = vmatpush1.msra.mxu0 %v144_v16  ;;  %243 = vmatpush1.msra.mxu1 %v134_v19  ;;  %v138_v40 = vld [vmem:[#allocation4 + $0x20] sm:$0xff]  ;;  %v140_v41 = vld [vmem:[#allocation4 + $0x30] sm:$0xff]  ;;  %v166_v46 = vld [vmem:[%s682_s4] sm:$0xff] }
  0x29   :  { %313 = vmatprep.subr.mxu0 %v137_v18  ;;  %378 = vmatprep.subr.mxu1 %v163_v21  ;;  %v171_v49 = vrot.slane %v166_v46, %v170_v44  ;;  %v179_v50 = vrot.slane %v166_v46, %v178_v45  ;;  %v175_v51 = vrot.slane %v166_v46, %v174_v47 }
  0x2a   :  { %314 = vmatpush1.msra.mxu0 %v136_v20  ;;  %v183_v52 = vrot.slane %v166_v46, %v182_v48  ;;  %v187_v5 = vrot.slane %v166_v46, %v186_v59  ;;  %v195_v6 = vrot.slane %v166_v46, %v194_v60  ;;  %v191_v7 = vrot.slane %v166_v46, %v190_v1 }
  0x2b   :  { %449 = vmatprep.subr.mxu0 %v165_v22  ;;  %v199_v8 = vrot.slane %v166_v46, %v198_v2 }
  0xe3   :  { %v129_v24 = vpop.f32.mrf.mxu0 }
  0xe4   :  { %v130_v25 = vadd.f32 %v518_v23, %v129_v24 }
  0xe5   :  { %v536_v26 = vpop.f32.mrf.mxu0 }
  0xe6   :  { %v133_v27 = vmax.f32 %v130_v25, 0.0 }
  0xe8   :  { %520 = vmatmul.mubr.msk.f32.vlgmr.msra.gmra.mxu1 %vm208_vm2, %v133_v27  ;;  %521 = vmatmul.mubr.msk.f32.vlgmr.msra.gmra.mxu0 %vm208_vm2, %v133_v27 }
  0xe9   :  { %379 = vmatpush1.msra.mxu1 %v162_v28  ;;  %450 = vmatpush1.msra.mxu0 %v164_v29 }
  0xea   :  { %380 = vmatprep.subr.mxu1 %v155_v30  ;;  %451 = vmatprep.subr.mxu0 %v157_v31 }
  0xeb   :  { %381 = vmatpush1.msra.mxu1 %v154_v32  ;;  %452 = vmatpush1.msra.mxu0 %v156_v33 }
  0xec   :  { %382 = vmatprep.subr.mxu1 %v147_v34  ;;  %453 = vmatprep.subr.mxu0 %v149_v35 }
  0xed   :  { %383 = vmatpush1.msra.mxu1 %v146_v36  ;;  %454 = vmatpush1.msra.mxu0 %v148_v37 }
  0xee   :  { %384 = vmatprep.subr.mxu1 %v139_v38  ;;  %455 = vmatprep.subr.mxu0 %v141_v39 }
  0xef   :  { %385 = vmatpush1.msra.mxu1 %v138_v40  ;;  %418 = vmatprep.mubr.f32.mxu1 %v595_v0 }
  0xf0   :  { %456 = vmatpush1.msra.mxu0 %v140_v41  ;;  %489 = vmatprep.mubr.f32.mxu0 %v595_v0 }
  0xf1   :  { %522 = vmatmul.mubr.msk.f32.vlgmr.msra.gmra.mxu1 %vm208_vm2, %v133_v27  ;;  %523 = vmatmul.mubr.msk.f32.vlgmr.msra.gmra.mxu0 %vm208_vm2, %v133_v27 }
 0x1a8   :  { %v278_v53 = vpop.f32.mrf.mxu1  ;;  %v349_v54 = vpop.f32.mrf.mxu0 }
 0x1a9   :  { %v279_v55 = vadd.f32 %v278_v53, %v171_v49  ;;  %v350_v56 = vadd.f32 %v349_v54, %v179_v50 }
 0x1aa   :  { %v280_v57 = vpop.f32.mrf.mxu1  ;;  %v351_v58 = vpop.f32.mrf.mxu0 }
 0x1ab   :  { %v496_v61 = vmax.f32 %v279_v55, 0.0  ;;  %v498_v62 = vmax.f32 %v350_v56, 0.0  ;;  %v281_v63 = vadd.f32 %v280_v57, %v175_v51  ;;  %v352_v0 = vadd.f32 %v351_v58, %v183_v52 }
 0x1ad   :  { %504 = vst [vmem:[%s683_s5] sm:$0xff] %v496_v61  ;;  %506 = vst [vmem:[%s683_s5 + $0x10] sm:$0xff] %v498_v62  ;;  %v497_v3 = vmax.f32 %v281_v63, 0.0  ;;  %v499_v4 = vmax.f32 %v352_v0, 0.0 }
 0x1af   :  { %505 = vst [vmem:[%s683_s5 + $0x8] sm:$0xff] %v497_v3  ;;  %507 = vst [vmem:[%s683_s5 + $0x18] sm:$0xff] %v499_v4 }
 0x1b1   :  { %v420_v9 = vpop.f32.mrf.mxu1  ;;  %v491_v10 = vpop.f32.mrf.mxu0 }
 0x1b2   :  { %v421_v11 = vadd.f32 %v420_v9, %v187_v5  ;;  %v492_v12 = vadd.f32 %v491_v10, %v195_v6 }
 0x1b3   :  { %v422_v13 = vpop.f32.mrf.mxu1  ;;  %v493_v14 = vpop.f32.mrf.mxu0 }
 0x1b4   :  { %v500_v15 = vmax.f32 %v421_v11, 0.0  ;;  %v502_v16 = vmax.f32 %v492_v12, 0.0  ;;  %v423_v17 = vadd.f32 %v422_v13, %v191_v7  ;;  %v494_v18 = vadd.f32 %v493_v14, %v199_v8 }
 0x1b6   :  { %508 = vst [vmem:[%s683_s5 + $0x20] sm:$0xff] %v500_v15  ;;  %510 = vst [vmem:[%s683_s5 + $0x30] sm:$0xff] %v502_v16  ;;  %v501_v19 = vmax.f32 %v423_v17, 0.0  ;;  %v503_v20 = vmax.f32 %v494_v18, 0.0 }
 0x1b8   :  { %509 = vst [vmem:[%s683_s5 + $0x28] sm:$0xff] %v501_v19  ;;  %511 = vst [vmem:[%s683_s5 + $0x38] sm:$0xff] %v503_v20 }
 0x1b9   :  { %516 = vsyncpa [#allocation3], 1 }
 0x1ba   :  { %517 = vsyncpa [#allocation5], 1 }

</bundles_post_ra>
